<compile_context>
chip_gen: v6e
topology: v6e:2x2x1
jax: 0.10.0
libtpu: 0.0.40
codegen_flags: <defaults>
</compile_context>

<pallas_src>
import jax
import jax.numpy as jnp
from jax.experimental import pallas as pl
from jax.experimental.pallas import tpu as pltpu


def _tiled_kernel(x_ref, pos_ref, o_ref):
    # x_ref / o_ref: (tS, E) activations/output for one batch element & seq tile
    # pos_ref:       (tS, E) position embeddings for this seq tile (shared over batch)
    o_ref[...] = (x_ref[...] + pos_ref[...]).astype(o_ref.dtype)


def _single_block_kernel(x_ref, pos_ref, o_ref):
    # Whole problem in one VMEM block: x (B,S,E) + pos (S,E) broadcast over batch.
    o_ref[...] = (x_ref[...] + pos_ref[...][None, :, :]).astype(o_ref.dtype)


def _sublane_multiple(dtype) -> int:
    """Preferred second-minor tile multiple for a dtype (f32->8, bf16->16, int8->32)."""
    itemsize = jnp.dtype(dtype).itemsize
    return max(8, 32 // max(1, itemsize))


def _pick_seq_tile(S: int, mult: int, bytes_per_row: int, budget_bytes: int):
    """Largest sublane-aligned seq tile that divides S and fits the VMEM budget.

    Returns None if no dividing tile exists within 2x of the budget-sized tile
    (awkward factorisation of S) -- caller falls back.
    """
    rows = max(mult, min(S, budget_bytes // max(1, bytes_per_row)))
    rows = (rows // mult) * mult
    if rows >= S:
        return S
    d = rows
    floor = max(mult, rows // 2)
    while d >= floor:
        if S % d == 0:
            return d
        d -= mult
    return None


def position_embedder_forward(input_embeddings: jax.Array,
                              embedding_table: jax.Array,
                              *,
                              out_dtype=None) -> jax.Array:
    """input_embeddings: [B, S, E]; embedding_table: [max_seq, E]."""
    B, S, E = input_embeddings.shape
    max_seq, E_t = embedding_table.shape
    assert max_seq >= S and E_t == E

    # PyTorch promotes before adding (bf16 activations + f32 table -> f32 out).
    # Pass out_dtype=input_embeddings.dtype to halve write traffic if narrow
    # outputs are acceptable (diverges from strict torch promotion).
    if out_dtype is None:
        out_dtype = jnp.result_type(input_embeddings.dtype, embedding_table.dtype)
    out_shape = jax.ShapeDtypeStruct((B, S, E), out_dtype)

    isx = jnp.dtype(input_embeddings.dtype).itemsize
    ist = jnp.dtype(embedding_table.dtype).itemsize
    iso = jnp.dtype(out_dtype).itemsize

    # Per-TensorCore VMEM budget (v7x: 64 MiB, v5e/v6e: 128 MiB physical).
    try:
        vmem_cap = int(pltpu.get_tpu_info().vmem_capacity_bytes)
    except Exception:
        vmem_cap = 64 << 20  # conservative (v7x per-TC) if query unavailable
    vmem_limit = min((vmem_cap * 3) // 4, 64 << 20)

    # ---------- small-shape fast path: one block, no grid, no pipeline overhead.
    total_live = (B * S * E) * (isx + iso) + S * E * ist
    if total_live <= min(vmem_limit // 2, 8 << 20):
        pos = jax.lax.slice(embedding_table, (0, 0), (S, E))
        return pl.pallas_call(
            _single_block_kernel,
            out_shape=out_shape,
            compiler_params=pltpu.CompilerParams(vmem_limit_bytes=vmem_limit),
        )(input_embeddings, pos)

    # ---------- tiled streaming path.
    mult = max(_sublane_multiple(d) for d in
               (input_embeddings.dtype, embedding_table.dtype, out_dtype))

    if S % mult != 0:
        # TODO(synk): ragged seq tiling for S not a multiple of the sublane pack
        # (would rely on Pallas OOB write-masking); plain XLA add is used instead.
        return (input_embeddings + embedding_table[:S][None, :, :]).astype(out_dtype)

    # Total live double-buffered bytes per seq row: 2 buffers each of x/pos/out.
    bytes_per_row = 2 * E * (isx + ist + iso)
    budget = (vmem_limit * 3) // 4  # leave headroom under the scoped limit
    tS = _pick_seq_tile(S, mult, bytes_per_row, budget)
    if tS is None:
        # TODO(synk): S has no sublane-aligned divisor near the VMEM budget;
        # a ragged-tile path would cover this without leaving Pallas.
        return (input_embeddings + embedding_table[:S][None, :, :]).astype(out_dtype)

    n_seq_tiles = S // tS

    # TODO(synk): for E not a multiple of 128 a wrapper-side lane-dense
    # reshape/pad would avoid masked vst partial stores (kernel is still correct).
    return pl.pallas_call(
        _tiled_kernel,
        out_shape=out_shape,
        grid_spec=pltpu.PrefetchScalarGridSpec(
            num_scalar_prefetch=0,
            # Seq-tile axis outermost, batch innermost: the pos tile's block
            # index is constant across the inner batch steps, so it is fetched
            # once per seq tile and stays VMEM-resident across the batch.
            grid=(n_seq_tiles, B),
            in_specs=[
                pl.BlockSpec((pl.Squeezed(), tS, E), lambda s, b: (b, s, 0)),
                pl.BlockSpec((tS, E), lambda s, b: (s, 0)),
            ],
            out_specs=pl.BlockSpec((pl.Squeezed(), tS, E), lambda s, b: (b, s, 0)),
        ),
        compiler_params=pltpu.CompilerParams(
            # Both axes parallel: megacore / v7x 2-TC can shard seq tiles or batch.
            dimension_semantics=("parallel", "parallel"),
            vmem_limit_bytes=vmem_limit,
        ),
    )(input_embeddings, embedding_table)


if __name__ == "__main__":
    key = jax.random.PRNGKey(0)
    k1, k2, k3, k4, k5, k6 = jax.random.split(key, 6)

    # --- 1) Small canonical shapes (single-block fast path), f32 ---------------
    batch, seq, embed = 2, 16, 128
    max_sequence_length = 32
    x_small = jax.random.normal(k1, (batch, seq, embed), jnp.float32)
    tbl_small = jax.random.normal(k2, (max_sequence_length, embed), jnp.float32)

    out = jax.block_until_ready(position_embedder_forward(x_small, tbl_small))
    ref = x_small + tbl_small[:seq][None, :, :]
    assert out.shape == ref.shape and out.dtype == ref.dtype
    assert jnp.allclose(out, ref, atol=1e-6, rtol=1e-6)

    # --- 2) Mixed precision (bf16 activations + f32 table -> f32 out) ----------
    x_bf16 = jax.random.normal(k3, (batch, seq, embed), jnp.bfloat16)
    out_mp = jax.block_until_ready(position_embedder_forward(x_bf16, tbl_small))
    ref_mp = x_bf16 + tbl_small[:seq][None, :, :]
    assert out_mp.dtype == jnp.float32
    assert jnp.allclose(out_mp, ref_mp, atol=1e-6, rtol=1e-6)

    # --- 3) Medium shapes to exercise the tiled / gridded path -----------------
    B2, S2, E2 = 2, 4096, 512
    x_big = jax.random.normal(k4, (B2, S2, E2), jnp.float32)
    tbl_big = jax.random.normal(k5, (S2, E2), jnp.float32)
    out_big = jax.block_until_ready(position_embedder_forward(x_big, tbl_big))
    ref_big = x_big + tbl_big[:S2][None, :, :]
    assert out_big.shape == ref_big.shape and out_big.dtype == ref_big.dtype
    assert jnp.allclose(out_big, ref_big, atol=1e-6, rtol=1e-6)

    print("KERNEL_OK")
</pallas_src>

<mosaic_0001>
module attributes {stable_mosaic.version = 11 : i64} {
  func.func @_single_block_kernel(%arg0: memref<2x16x128xf32, #tpu.memory_space<vmem>>, %arg1: memref<16x128xf32, #tpu.memory_space<vmem>>, %arg2: memref<2x16x128xf32, #tpu.memory_space<vmem>>) attributes {dimension_semantics = [], scalar_prefetch = 0 : i64, scratch_operands = 0 : i64, tpu.core_type = #tpu.core_type<tc>} {
    %c0 = arith.constant 0 : index
    %c0_0 = arith.constant 0 : index
    %c0_1 = arith.constant 0 : index
    %0 = vector.load %arg0[%c0, %c0_0, %c0_1] : memref<2x16x128xf32, #tpu.memory_space<vmem>>, vector<2x16x128xf32>
    %c0_2 = arith.constant 0 : index
    %c0_3 = arith.constant 0 : index
    %1 = vector.load %arg1[%c0_2, %c0_3] : memref<16x128xf32, #tpu.memory_space<vmem>>, vector<16x128xf32>
    %2 = vector.shape_cast %1 : vector<16x128xf32> to vector<1x16x128xf32>
    %3 = vector.broadcast %2 : vector<1x16x128xf32> to vector<2x16x128xf32>
    %4 = arith.addf %0, %3 : vector<2x16x128xf32>
    %c0_4 = arith.constant 0 : index
    %c0_5 = arith.constant 0 : index
    %c0_6 = arith.constant 0 : index
    %5 = vector.load %arg2[%c0_4, %c0_5, %c0_6] : memref<2x16x128xf32, #tpu.memory_space<vmem>>, vector<2x16x128xf32>
    tpu.vector_store %arg2[%c0_4, %c0_5, %c0_6], %4 {strides = array<i32>} : memref<2x16x128xf32, #tpu.memory_space<vmem>>, vector<2x16x128xf32>,
    return
  }
}

</mosaic_0001>

<bundles_post_ra>
// kernel: tpu_custom_call.1
= control target key start
LH: loop header
LB: loop body
LE: loop exit
PB: predicated region body
PF: predicated region fallthrough
CT: control target
= control target key end

     0   :  { %7 = vsyncpa [#allocation3], 0  ;;  %s181_s0 = inlined_call_operand.hbm [shape: f32[2,16,128], index: 0, kind: input, shape index: {}]   ;;  %s182_s1 = inlined_call_operand.hbm [shape: f32[16,128], index: 1, kind: input, shape index: {}]   ;;  %s183_s2 = inlined_call_operand.hbm [shape: f32[2,16,128], index: 2, kind: output, shape index: {}]  }
   0x1   :  { %8 = vsyncpa [#allocation6], 0 }
   0x2   :  { %9 = vsyncpa [#allocation4], 0  ;;  %s143_s9 = smov [#allocation2]  }
   0x3   :  { %s15_s10 = sshll.u32 %s143_s9, 4  ;;  %s16_s10 = int_to_ptr.vmem [resolvable:$true] %s15_s10 }
   0x4   :  { %s85_s11 = scalar_lea.vmem %s16_s10, 512  ;;  %p90_p1 = scmp.lt.s32.totalorder %s16_s10, %s16_s10 }
   0x5   :  { %p86_p0 = scmp.ne.s32.totalorder %s16_s10, %s85_s11  ;;  %p91_p2 = scmp.lt.s32.totalorder %s85_s11, %s85_s11 }
   0x7   :  { %p92_p3 = por %p91_p2, %p90_p1 }
   0x9   :  { %p93_p4 = pnand %p92_p3, %p86_p0 }
   0xb   :  { %96 = shalt.err (!%p93_p4)
}
   0xc   :  { %s144_s12 = smov 128   ;;  %s145_s13 = smov 8  }
   0xd   :  { %21 = dma.hbm_to_vmem [thread:$0]  %s181_s0, 512, %s16_s10, [#allocation3], %s144_s12, %s144_s12, %s145_s13  }
   0xe   :  { %s146_s16 = smov [#allocation5]  }
   0xf   :  { %s27_s17 = sshll.u32 %s146_s16, 4  ;;  %s28_s17 = int_to_ptr.vmem [resolvable:$true] %s27_s17 }
  0x10   :  { %s105_s18 = scalar_lea.vmem %s28_s17, 256  ;;  %p110_p6 = scmp.lt.s32.totalorder %s28_s17, %s28_s17 }
  0x11   :  { %p106_p5 = scmp.ne.s32.totalorder %s28_s17, %s105_s18  ;;  %p111_p7 = scmp.lt.s32.totalorder %s105_s18, %s105_s18 }
  0x13   :  { %p112_p8 = por %p111_p7, %p110_p6 }
  0x15   :  { %p113_p9 = pnand %p112_p8, %p106_p5 }
  0x17   :  { %116 = shalt.err (!%p113_p9)
}
  0x18   :  { %33 = dma.hbm_to_vmem [thread:$0]  %s182_s1, 256, %s28_s17, [#allocation6], %s144_s12, %s144_s12, %s145_s13  }
  0x19   :  { %137 = dma.done.wait [#allocation3], 512  }
  0x1a   :  { %138 = vsyncadd [#allocation3], 4294966784 }
  0x1b   :  { %139 = dma.done.wait [#allocation6], 256  }
  0x1c   :  { %140 = vsyncadd [#allocation6], 4294967040  ;;  %s147_s0 = smov [#allocation7]   ;;  %v40_v0 = vld [vmem:[#allocation2] sm:$0xff]  ;;  %v41_v2 = vld [vmem:[#allocation2 + $0x8] sm:$0xff] }
  0x1d   :  { %s59_s21 = sshll.u32 %s147_s0, 4  ;;  %v44_v1 = vld [vmem:[#allocation5] sm:$0xff]  ;;  %v45_v4 = vld [vmem:[#allocation5 + $0x8] sm:$0xff]  ;;  %v42_v5 = vld [vmem:[#allocation2 + $0x10] sm:$0xff]  ;;  %s60_s21 = int_to_ptr.vmem [resolvable:$true] %s59_s21 }
  0x1e   :  { %v46_v3 = vadd.f32 %v44_v1, %v40_v0  ;;  %v43_v6 = vld [vmem:[#allocation2 + $0x18] sm:$0xff]  ;;  %v47_v7 = vadd.f32 %v45_v4, %v41_v2  ;;  %v48_v8 = vadd.f32 %v44_v1, %v42_v5  ;;  %s117_s1 = scalar_lea.vmem %s60_s21, 512  ;;  %p122_p11 = scmp.lt.s32.totalorder %s60_s21, %s60_s21 }
  0x1f   :  { %v49_v9 = vadd.f32 %v45_v4, %v43_v6  ;;  %p118_p10 = scmp.ne.s32.totalorder %s60_s21, %s117_s1  ;;  %p123_p12 = scmp.lt.s32.totalorder %s117_s1, %s117_s1 }
  0x20   :  { %50 = vst [vmem:[#allocation7] sm:$0xff] %v46_v3  ;;  %51 = vst [vmem:[#allocation7 + $0x8] sm:$0xff] %v47_v7 }
  0x21   :  { %52 = vst [vmem:[#allocation7 + $0x10] sm:$0xff] %v48_v8  ;;  %53 = vst [vmem:[#allocation7 + $0x18] sm:$0xff] %v49_v9  ;;  %p124_p13 = por %p123_p12, %p122_p11 }
  0x23   :  { %p125_p0 = pnand %p124_p13, %p118_p10 }
  0x25   :  { %128 = shalt.err (!%p125_p0)
}
  0x26   :  { %65 = dma.vmem_to_hbm [thread:$0]  %s60_s21, 512, %s183_s2, [#allocation4], %s144_s12, %s144_s12, %s145_s13  }
  0x27   :  { %141 = dma.done.wait [#allocation4], 512  }
  0x28   :  { %142 = vsyncadd [#allocation4], 4294966784 }
  0x29   :  { %69 = vsyncpa [#allocation3], 1 }
  0x2a   :  { %70 = vsyncpa [#allocation6], 1 }
  0x2b   :  { %71 = vsyncpa [#allocation4], 1 }

</bundles_post_ra>
